<compile_context>
chip_gen: v5e
topology: v5e:2x2
jax: 0.10.0
libtpu: 0.0.40
codegen_flags: <defaults>
</compile_context>

<pallas_src>
import functools

import jax
import jax.numpy as jnp
from jax.experimental import pallas as pl
from jax.experimental.pallas import tpu as pltpu


def _round_up(x: int, m: int) -> int:
    return ((x + m - 1) // m) * m


def _vmem_budget_bytes() -> int:
    """Usable scoped-VMEM budget for this kernel (leave headroom for the
    compiler's internal scratch)."""
    phys = 128 << 20
    try:
        info = pltpu.get_tpu_info()
        phys = int(getattr(info, "vmem_capacity_bytes", phys))
    except Exception:
        phys = 64 << 20  # be conservative (v7x per-core VMEM) if query fails
    return (phys * 3) // 4


def _pick_tm(batch: int, sub: int, tm_max: int) -> int:
    """Batch tile: sublane-packed, <= tm_max, and >= 2 tiles when possible so
    v7x's two TensorCores both get work on the 'parallel' batch axis."""
    b_p = _round_up(batch, sub)
    if b_p <= sub:
        return sub
    if b_p > 2 * tm_max:
        return tm_max
    half = _round_up(-(-b_p // 2), sub)  # ceil(b_p/2) rounded to sublane pack
    return min(half, tm_max)


# ---------------------------------------------------------------------------
# Kernels
# ---------------------------------------------------------------------------

def _ffn_resident_kernel(x_ref, w1_ref, b1_ref, w2_ref, b2_ref, o_ref):
    # hidden = relu(x @ w1 + b1); out = hidden @ w2 + b2
    # x is cast to the MXU compute dtype in-kernel (no wrapper-side cast copy);
    # both dots accumulate in f32; bias/ReLU epilogue runs on lane-dense f32.
    x = x_ref[...].astype(w1_ref.dtype)
    h = jnp.dot(x, w1_ref[...], preferred_element_type=jnp.float32)
    h = jnp.maximum(h + b1_ref[...], 0.0)            # b1 is (1, hid_p) broadcast
    h = h.astype(w2_ref.dtype)
    o = jnp.dot(h, w2_ref[...], preferred_element_type=jnp.float32)
    o_ref[...] = (o + b2_ref[...]).astype(o_ref.dtype)


def _ffn_tiled_kernel(x_ref, w1_ref, b1_ref, w2_ref, b2_ref, o_ref, acc_ref):
    # Hidden dimension tiled across the last grid axis ("arbitrary"):
    # each step computes one relu(x @ w1[:, k]) chunk and accumulates its
    # contribution to the output in an f32 VMEM scratch.
    k = pl.program_id(1)

    @pl.when(k == 0)
    def _():
        acc_ref[...] = jnp.zeros_like(acc_ref)

    x = x_ref[...].astype(w1_ref.dtype)
    h = jnp.dot(x, w1_ref[...], preferred_element_type=jnp.float32)
    h = jnp.maximum(h + b1_ref[...], 0.0).astype(w2_ref.dtype)
    acc_ref[...] += jnp.dot(h, w2_ref[...], preferred_element_type=jnp.float32)

    @pl.when(k == pl.num_programs(1) - 1)
    def _():
        o_ref[...] = (acc_ref[...] + b2_ref[...]).astype(o_ref.dtype)


# ---------------------------------------------------------------------------
# Parameter prep (one-time, NOT per-call)
# ---------------------------------------------------------------------------

def prepare_ffn_params(w1, b1, w2, b2, compute_dtype=jnp.float32):
    """Transpose PyTorch-layout weights to (in, hidden)/(hidden, out) and
    zero-pad every feature dim to a multiple of 128 so every kernel operand /
    store is lane-dense.  Zero bias padding keeps padded hidden columns exactly
    0 after ReLU, so they contribute nothing to the second matmul.

    w1: (hidden, in), b1: (hidden,), w2: (out, hidden), b2: (out,)
    Returns (padded params tuple, logical dims tuple).
    """
    hid, in_f = w1.shape
    out_f = w2.shape[0]
    in_p = _round_up(in_f, 128)
    hid_p = _round_up(hid, 128)
    out_p = _round_up(out_f, 128)

    w1_t = jnp.zeros((in_p, hid_p), compute_dtype)
    w1_t = w1_t.at[:in_f, :hid].set(jnp.transpose(w1).astype(compute_dtype))
    b1_p = jnp.zeros((1, hid_p), jnp.float32).at[0, :hid].set(
        b1.astype(jnp.float32))

    w2_t = jnp.zeros((hid_p, out_p), compute_dtype)
    w2_t = w2_t.at[:hid, :out_f].set(jnp.transpose(w2).astype(compute_dtype))
    b2_p = jnp.zeros((1, out_p), jnp.float32).at[0, :out_f].set(
        b2.astype(jnp.float32))

    return (w1_t, b1_p, w2_t, b2_p), (in_f, hid, out_f)


# ---------------------------------------------------------------------------
# Forward pass
# ---------------------------------------------------------------------------

@functools.partial(
    jax.jit,
    static_argnames=("dims", "tm_max", "force_hidden_tiling", "hid_tile"))
def feedforward(x, params, dims, *, tm_max=256, force_hidden_tiling=False,
                hid_tile=512):
    """x: (B, in_f) -> (B, out_f); same math as the PyTorch FeedForward."""
    w1_t, b1_p, w2_t, b2_p = params
    in_f, hid, out_f = dims
    in_p, hid_p = w1_t.shape
    out_p = w2_t.shape[1]

    cdt = w1_t.dtype
    itm = jnp.dtype(cdt).itemsize                 # compute-dtype bytes
    x_itm = jnp.dtype(x.dtype).itemsize
    out_dtype = x.dtype                           # emit output in activation dtype
    out_itm = jnp.dtype(out_dtype).itemsize

    B = x.shape[0]
    # Sub-32-bit compute dtypes pack along sublanes: tile in units of the pack.
    sub = 8 if itm >= 4 else (16 if itm == 2 else 32)
    tm = _pick_tm(B, sub, tm_max)
    b_p = _round_up(B, tm)

    # Pad only what correctness needs: feature dim to in_p (zero K columns keep
    # the dot exact), batch to a tile multiple.  No dtype cast, no fresh buffer
    # when no padding is required.
    x_p = x
    if (b_p, in_p) != (B, in_f):
        x_p = jnp.pad(x, ((0, b_p - B), (0, in_p - in_f)))

    budget = _vmem_budget_bytes()

    # VMEM accounting: streamed x/out tiles are double-buffered by the
    # pipeline; the f32 hidden temp and its compute-dtype cast copy live in
    # VMEM/internal scratch; resident weights use one buffer (Buffered(1)).
    streamed = 2 * tm * in_p * x_itm + 2 * tm * out_p * out_itm
    hidden_tmp = tm * hid_p * (4 + itm)
    resident = (w1_t.size + w2_t.size) * itm + (b1_p.size + b2_p.size) * 4
    resident_need = resident + streamed + hidden_tmp + (1 << 20)   # ~1 MiB slack

    use_resident = (not force_hidden_tiling) and (resident_need <= budget)

    # Advisory cost estimate so XLA schedules the pad/slice glue around us.
    flops = 2 * b_p * (in_p * hid_p + hid_p * out_p)
    bytes_accessed = (b_p * in_p * x_itm
                      + (w1_t.size + w2_t.size) * itm
                      + (b1_p.size + b2_p.size) * 4
                      + b_p * out_p * out_itm)
    cost = pl.CostEstimate(flops=flops, transcendentals=0,
                           bytes_accessed=bytes_accessed)

    if use_resident:
        vmem_limit = int(min(budget, max(resident_need + (2 << 20), 16 << 20)))
        out = pl.pallas_call(
            _ffn_resident_kernel,
            out_shape=jax.ShapeDtypeStruct((b_p, out_p), out_dtype),
            grid=(b_p // tm,),
            in_specs=[
                # x: tiled over batch (double-buffered stream).
                pl.BlockSpec((tm, in_p), lambda i: (i, 0)),
                # Weights / biases: grid-resident -> single buffer.
                pl.BlockSpec((in_p, hid_p), lambda i: (0, 0),
                             pipeline_mode=pl.Buffered(1)),
                pl.BlockSpec((1, hid_p), lambda i: (0, 0),
                             pipeline_mode=pl.Buffered(1)),
                pl.BlockSpec((hid_p, out_p), lambda i: (0, 0),
                             pipeline_mode=pl.Buffered(1)),
                pl.BlockSpec((1, out_p), lambda i: (0, 0),
                             pipeline_mode=pl.Buffered(1)),
            ],
            out_specs=pl.BlockSpec((tm, out_p), lambda i: (i, 0)),
            compiler_params=pltpu.CompilerParams(
                dimension_semantics=("parallel",),
                vmem_limit_bytes=vmem_limit,
            ),
            cost_estimate=cost,
        )(x_p, w1_t, b1_p, w2_t, b2_p)
    else:
        # Hidden/K tiling: grid=(batch tiles, hidden tiles); f32 accumulator in
        # VMEM, init on first / bias+store on last hidden tile.
        t_hid = min(_round_up(hid_tile, 128), hid_p)
        while hid_p % t_hid:          # hid_p is a multiple of 128, so terminates
            t_hid -= 128
        n_k = hid_p // t_hid

        streamed_w = 2 * (in_p * t_hid + t_hid * out_p) * itm + 2 * t_hid * 4
        hidden_tmp_t = tm * t_hid * (4 + itm)
        acc_bytes = tm * out_p * 4
        tiled_need = (streamed + streamed_w + hidden_tmp_t + acc_bytes
                      + out_p * 4 + (1 << 20))
        vmem_limit = int(min(budget, max(tiled_need + (2 << 20), 16 << 20)))

        out = pl.pallas_call(
            _ffn_tiled_kernel,
            out_shape=jax.ShapeDtypeStruct((b_p, out_p), out_dtype),
            grid=(b_p // tm, n_k),
            in_specs=[
                pl.BlockSpec((tm, in_p), lambda i, k: (i, 0)),     # x
                pl.BlockSpec((in_p, t_hid), lambda i, k: (0, k)),  # w1 hid-tile
                pl.BlockSpec((1, t_hid), lambda i, k: (0, k)),     # b1 hid-tile
                pl.BlockSpec((t_hid, out_p), lambda i, k: (k, 0)), # w2 hid-tile
                pl.BlockSpec((1, out_p), lambda i, k: (0, 0),
                             pipeline_mode=pl.Buffered(1)),        # b2 resident
            ],
            out_specs=pl.BlockSpec((tm, out_p), lambda i, k: (i, 0)),
            scratch_shapes=[pltpu.VMEM((tm, out_p), jnp.float32)],
            compiler_params=pltpu.CompilerParams(
                dimension_semantics=("parallel", "arbitrary"),
                vmem_limit_bytes=vmem_limit,
            ),
            cost_estimate=cost,
        )(x_p, w1_t, b1_p, w2_t, b2_p)

    # Slice padding off outside the kernel; output is already in x.dtype.
    return out[:B, :out_f]


if __name__ == "__main__":
    # Small shapes consistent with the clustering MLP: 4 input features,
    # 32 hidden units, 3 output classes, batch of 8.
    B, IN, HID, OUT = 8, 4, 32, 3

    key = jax.random.PRNGKey(0)
    kx, kw1, kb1, kw2, kb2 = jax.random.split(key, 5)

    x = jax.random.normal(kx, (B, IN), dtype=jnp.float32)
    # Same parameter shapes nn.Linear would create (weight: (out, in)).
    w1 = jax.random.normal(kw1, (HID, IN), dtype=jnp.float32) * 0.1
    b1 = jax.random.normal(kb1, (HID,), dtype=jnp.float32) * 0.1
    w2 = jax.random.normal(kw2, (OUT, HID), dtype=jnp.float32) * 0.1
    b2 = jax.random.normal(kb2, (OUT,), dtype=jnp.float32) * 0.1

    # Plain-JAX reference (same math as the PyTorch module).
    ref = jnp.maximum(x @ w1.T + b1, 0.0) @ w2.T + b2

    # f32 resident path: exact match to the reference.
    params_f32, dims = prepare_ffn_params(w1, b1, w2, b2, jnp.float32)
    y = feedforward(x, params_f32, dims)
    jax.block_until_ready(y)
    assert y.shape == (B, OUT) and y.dtype == x.dtype
    assert jnp.allclose(y, ref, atol=1e-5, rtol=1e-5)

    # bf16-MXU path (bf16 weights, in-kernel activation cast, f32 accumulate).
    params_bf16, _ = prepare_ffn_params(w1, b1, w2, b2, jnp.bfloat16)
    y_bf16 = feedforward(x, params_bf16, dims)
    jax.block_until_ready(y_bf16)
    assert jnp.allclose(y_bf16, ref, atol=3e-2, rtol=3e-2)

    # Hidden-tiled path (exercised via force flag so the accumulator /
    # pl.when init-finalize structure is validated on real hardware).
    HID2 = 384
    kw1b, kb1b, kw2b, kb2b = jax.random.split(jax.random.PRNGKey(1), 4)
    w1b = jax.random.normal(kw1b, (HID2, IN), dtype=jnp.float32) * 0.05
    b1b = jax.random.normal(kb1b, (HID2,), dtype=jnp.float32) * 0.05
    w2b = jax.random.normal(kw2b, (OUT, HID2), dtype=jnp.float32) * 0.05
    b2b = jax.random.normal(kb2b, (OUT,), dtype=jnp.float32) * 0.05
    ref2 = jnp.maximum(x @ w1b.T + b1b, 0.0) @ w2b.T + b2b

    params2, dims2 = prepare_ffn_params(w1b, b1b, w2b, b2b, jnp.float32)
    y2 = feedforward(x, params2, dims2, force_hidden_tiling=True, hid_tile=128)
    jax.block_until_ready(y2)
    assert jnp.allclose(y2, ref2, atol=1e-5, rtol=1e-5)

    # TODO(synk): add an fp8 weight path (per-channel scale folded into the
    # epilogue) for v7x weight-stationary inference.
    print("KERNEL_OK")
</pallas_src>

<mosaic_0001>
module attributes {stable_mosaic.version = 11 : i64} {
  func.func @_ffn_resident_kernel(%arg0: i32, %arg1: memref<8x128xf32, #tpu.memory_space<vmem>>, %arg2: memref<128x128xf32, #tpu.memory_space<vmem>>, %arg3: memref<1x128xf32, #tpu.memory_space<vmem>>, %arg4: memref<128x128xf32, #tpu.memory_space<vmem>>, %arg5: memref<1x128xf32, #tpu.memory_space<vmem>>, %arg6: memref<8x128xf32, #tpu.memory_space<vmem>>) attributes {dimension_semantics = [#tpu.dimension_semantics<parallel>], iteration_bounds = array<i64: 1>, scalar_prefetch = 0 : i64, scratch_operands = 0 : i64, tpu.core_type = #tpu.core_type<tc>, window_params = [{transform_indices = @transform_0, window_bounds = array<i64: 8, 128>}, {pipeline_mode = #tpu.pipeline_mode<synchronous>, transform_indices = @transform_1, window_bounds = array<i64: 128, 128>}, {pipeline_mode = #tpu.pipeline_mode<synchronous>, transform_indices = @transform_2, window_bounds = array<i64: 1, 128>}, {pipeline_mode = #tpu.pipeline_mode<synchronous>, transform_indices = @transform_3, window_bounds = array<i64: 128, 128>}, {pipeline_mode = #tpu.pipeline_mode<synchronous>, transform_indices = @transform_4, window_bounds = array<i64: 1, 128>}, {transform_indices = @transform_5, window_bounds = array<i64: 8, 128>}]} {
    %c0 = arith.constant 0 : index
    %c0_0 = arith.constant 0 : index
    %0 = vector.load %arg1[%c0, %c0_0] : memref<8x128xf32, #tpu.memory_space<vmem>>, vector<8x128xf32>
    %c0_1 = arith.constant 0 : index
    %c0_2 = arith.constant 0 : index
    %1 = vector.load %arg2[%c0_1, %c0_2] : memref<128x128xf32, #tpu.memory_space<vmem>>, vector<128x128xf32>
    %cst = arith.constant dense<0.000000e+00> : vector<8x128xf32>
    %2 = tpu.matmul %0, %1, %cst {dimension_numbers = #tpu.dot_dimension_numbers<[1], [0], [0], [1], [0, 0, 1, 1], [], []>} : vector<8x128xf32>, vector<128x128xf32>, vector<8x128xf32> -> vector<8x128xf32>
    %c0_3 = arith.constant 0 : index
    %c0_4 = arith.constant 0 : index
    %3 = vector.load %arg3[%c0_3, %c0_4] : memref<1x128xf32, #tpu.memory_space<vmem>>, vector<1x128xf32>
    %4 = vector.broadcast %3 : vector<1x128xf32> to vector<8x128xf32>
    %5 = arith.addf %2, %4 : vector<8x128xf32>
    %cst_5 = arith.constant 0.000000e+00 : f32
    %6 = vector.broadcast %cst_5 : f32 to vector<8x128xf32>
    %7 = arith.maximumf %5, %6 : vector<8x128xf32>
    %c0_6 = arith.constant 0 : index
    %c0_7 = arith.constant 0 : index
    %8 = vector.load %arg4[%c0_6, %c0_7] : memref<128x128xf32, #tpu.memory_space<vmem>>, vector<128x128xf32>
    %cst_8 = arith.constant dense<0.000000e+00> : vector<8x128xf32>
    %9 = tpu.matmul %7, %8, %cst_8 {dimension_numbers = #tpu.dot_dimension_numbers<[1], [0], [0], [1], [0, 0, 1, 1], [], []>} : vector<8x128xf32>, vector<128x128xf32>, vector<8x128xf32> -> vector<8x128xf32>
    %c0_9 = arith.constant 0 : index
    %c0_10 = arith.constant 0 : index
    %10 = vector.load %arg5[%c0_9, %c0_10] : memref<1x128xf32, #tpu.memory_space<vmem>>, vector<1x128xf32>
    %11 = vector.broadcast %10 : vector<1x128xf32> to vector<8x128xf32>
    %12 = arith.addf %9, %11 : vector<8x128xf32>
    %c0_11 = arith.constant 0 : index
    %c0_12 = arith.constant 0 : index
    %13 = vector.load %arg6[%c0_11, %c0_12] : memref<8x128xf32, #tpu.memory_space<vmem>>, vector<8x128xf32>
    tpu.vector_store %arg6[%c0_11, %c0_12], %12 {strides = array<i32>} : memref<8x128xf32, #tpu.memory_space<vmem>>, vector<8x128xf32>,
    return
  }
  func.func @transform_0(%arg0: i32) -> (i32, i32) {
    %c0_i32 = arith.constant 0 : i32
    %c0_i32_0 = arith.constant 0 : i32
    return %arg0, %c0_i32 : i32, i32
  }
  func.func @transform_1(%arg0: i32) -> (i32, i32) {
    %c0_i32 = arith.constant 0 : i32
    %c0_i32_0 = arith.constant 0 : i32
    %c0_i32_1 = arith.constant 0 : i32
    return %c0_i32, %c0_i32_0 : i32, i32
  }
  func.func @transform_2(%arg0: i32) -> (i32, i32) {
    %c0_i32 = arith.constant 0 : i32
    %c0_i32_0 = arith.constant 0 : i32
    %c0_i32_1 = arith.constant 0 : i32
    return %c0_i32, %c0_i32_0 : i32, i32
  }
  func.func @transform_3(%arg0: i32) -> (i32, i32) {
    %c0_i32 = arith.constant 0 : i32
    %c0_i32_0 = arith.constant 0 : i32
    %c0_i32_1 = arith.constant 0 : i32
    return %c0_i32, %c0_i32_0 : i32, i32
  }
  func.func @transform_4(%arg0: i32) -> (i32, i32) {
    %c0_i32 = arith.constant 0 : i32
    %c0_i32_0 = arith.constant 0 : i32
    %c0_i32_1 = arith.constant 0 : i32
    return %c0_i32, %c0_i32_0 : i32, i32
  }
  func.func @transform_5(%arg0: i32) -> (i32, i32) {
    %c0_i32 = arith.constant 0 : i32
    %c0_i32_0 = arith.constant 0 : i32
    return %arg0, %c0_i32 : i32, i32
  }
}

</mosaic_0001>

<bundles_post_ra>
// kernel: feedforward.1
= control target key start
LH: loop header
LB: loop body
LE: loop exit
PB: predicated region body
PF: predicated region fallthrough
CT: control target
= control target key end

     0   :  { %10 = vsyncpa [#allocation3], 0  ;;  %s251_s0 = inlined_call_operand.vmem [shape: f32[8,128], index: 0, kind: input, shape index: {}]   ;;  %s252_s1 = inlined_call_operand.hbm [shape: f32[128,128], index: 1, kind: input, shape index: {}]   ;;  %s253_s2 = inlined_call_operand.vmem [shape: f32[1,128], index: 2, kind: input, shape index: {}]   ;;  %s254_s3 = inlined_call_operand.hbm [shape: f32[128,128], index: 3, kind: input, shape index: {}]   ;;  %s255_s4 = inlined_call_operand.vmem [shape: f32[1,128], index: 4, kind: input, shape index: {}]   ;;  %s256_s5 = inlined_call_operand.vmem [shape: f32[8,128], index: 5, kind: output, shape index: {}]  }
   0x1   :  { %s18_s20 = sshll.u32 %s252_s1, 4  ;;  %s19_s20 = int_to_ptr.hbm [resolvable:$true] %s18_s20 }
   0x2   :  { %11 = vsyncpa [#allocation5], 0  ;;  %s199_s21 = smov [#allocation2]   ;;  %s33_s25 = sshll.u32 %s254_s3, 4  ;;  %s34_s25 = int_to_ptr.hbm [resolvable:$true] %s33_s25 }
   0x3   :  { %s20_s22 = sshll.u32 %s199_s21, 4  ;;  %s200_s26 = smov 128   ;;  %s21_s22 = int_to_ptr.vmem [resolvable:$true] %s20_s22 }
   0x4   :  { %s201_s27 = smov 8   ;;  %s202_s28 = smov [#allocation4]  }
   0x5   :  { %26 = dma.hbm_to_vmem [thread:$0]  %s19_s20, 2048, %s21_s22, [#allocation3], %s200_s26, %s200_s26, %s201_s27  }
   0x6   :  { %s35_s29 = sshll.u32 %s202_s28, 4  ;;  %s36_s29 = int_to_ptr.vmem [resolvable:$true] %s35_s29 }
   0x7   :  { %41 = dma.hbm_to_vmem [thread:$0]  %s34_s25, 2048, %s36_s29, [#allocation5], %s200_s26, %s200_s26, %s201_s27  }
   0x8   :  { %195 = dma.done.wait [#allocation3], 2048  }
   0x9   :  { %196 = vsyncadd [#allocation3], 4294965248 }
   0xa   :  { %197 = dma.done.wait [#allocation5], 2048  }
   0xb   :  { %198 = vsyncadd [#allocation5], 4294965248  ;;  %v68_v0 = vld [vmem:[#allocation2 + $0x78] sm:$0xff]  ;;  %v67_v1 = vld [vmem:[#allocation2 + $0x70] sm:$0xff] }
   0xc   :  { %73 = vmatpush.msra.mxu0 %v68_v0  ;;  %v66_v2 = vld [vmem:[#allocation2 + $0x68] sm:$0xff]  ;;  %v65_v3 = vld [vmem:[#allocation2 + $0x60] sm:$0xff]  ;;  %v109_v4 = vld [vmem:[#allocation4 + $0x78] sm:$0xff] }
   0xd   :  { %v64_v5 = vld [vmem:[#allocation2 + $0x58] sm:$0xff]  ;;  %114 = vmatpush.msra.mxu1 %v109_v4  ;;  %v108_v6 = vld [vmem:[#allocation4 + $0x70] sm:$0xff]  ;;  %v107_v7 = vld [vmem:[#allocation4 + $0x68] sm:$0xff] }
   0xe   :  { %74 = vmatpush.msra.mxu0 %v67_v1  ;;  %v63_v8 = vld [vmem:[#allocation2 + $0x50] sm:$0xff]  ;;  %v106_v9 = vld [vmem:[#allocation4 + $0x60] sm:$0xff]  ;;  %v62_v10 = vld [vmem:[#allocation2 + $0x48] sm:$0xff] }
   0xf   :  { %115 = vmatpush.msra.mxu1 %v108_v6  ;;  %v105_v11 = vld [vmem:[#allocation4 + $0x58] sm:$0xff]  ;;  %v61_v12 = vld [vmem:[#allocation2 + $0x40] sm:$0xff]  ;;  %v104_v13 = vld [vmem:[#allocation4 + $0x50] sm:$0xff] }
  0x10   :  { %75 = vmatpush.msra.mxu0 %v66_v2  ;;  %v60_v14 = vld [vmem:[#allocation2 + $0x38] sm:$0xff]  ;;  %v103_v15 = vld [vmem:[#allocation4 + $0x48] sm:$0xff]  ;;  %v59_v16 = vld [vmem:[#allocation2 + $0x30] sm:$0xff] }
  0x11   :  { %116 = vmatpush.msra.mxu1 %v107_v7  ;;  %v102_v17 = vld [vmem:[#allocation4 + $0x40] sm:$0xff]  ;;  %v58_v18 = vld [vmem:[#allocation2 + $0x28] sm:$0xff]  ;;  %v101_v19 = vld [vmem:[#allocation4 + $0x38] sm:$0xff] }
  0x12   :  { %76 = vmatpush.msra.mxu0 %v65_v3  ;;  %v57_v20 = vld [vmem:[#allocation2 + $0x20] sm:$0xff]  ;;  %v100_v21 = vld [vmem:[#allocation4 + $0x30] sm:$0xff]  ;;  %v56_v22 = vld [vmem:[#allocation2 + $0x18] sm:$0xff] }
  0x13   :  { %117 = vmatpush.msra.mxu1 %v106_v9  ;;  %v99_v23 = vld [vmem:[#allocation4 + $0x28] sm:$0xff]  ;;  %v55_v24 = vld [vmem:[#allocation2 + $0x10] sm:$0xff]  ;;  %v98_v25 = vld [vmem:[#allocation4 + $0x20] sm:$0xff] }
  0x14   :  { %77 = vmatpush.msra.mxu0 %v64_v5  ;;  %v54_v26 = vld [vmem:[#allocation2 + $0x8] sm:$0xff]  ;;  %v97_v27 = vld [vmem:[#allocation4 + $0x18] sm:$0xff]  ;;  %v53_v28 = vld [vmem:[#allocation2] sm:$0xff] }
  0x15   :  { %118 = vmatpush.msra.mxu1 %v105_v11  ;;  %v52_v29 = vld [vmem:[%s251_s0] sm:$0xff]  ;;  %v96_v30 = vld [vmem:[#allocation4 + $0x10] sm:$0xff]  ;;  %v95_v31 = vld [vmem:[#allocation4 + $0x8] sm:$0xff] }
  0x16   :  { %78 = vmatpush.msra.mxu0 %v63_v8  ;;  %v94_v32 = vld [vmem:[#allocation4] sm:$0xff] }
  0x17   :  { %119 = vmatpush.msra.mxu1 %v104_v13  ;;  %v145_v33 = vld [vmem:[%s253_s2] ss:$0 sm:$0xff] }
  0x18   :  { %79 = vmatpush.msra.mxu0 %v62_v10  ;;  %v146_v37 = vld [vmem:[%s255_s4] ss:$0 sm:$0xff] }
  0x19   :  { %120 = vmatpush.msra.mxu1 %v103_v15 }
  0x1a   :  { %80 = vmatpush.msra.mxu0 %v61_v12 }
  0x1b   :  { %121 = vmatpush.msra.mxu1 %v102_v17 }
  0x1c   :  { %81 = vmatpush.msra.mxu0 %v60_v14 }
  0x1d   :  { %122 = vmatpush.msra.mxu1 %v101_v19 }
  0x1e   :  { %82 = vmatpush.msra.mxu0 %v59_v16 }
  0x1f   :  { %123 = vmatpush.msra.mxu1 %v100_v21 }
  0x20   :  { %83 = vmatpush.msra.mxu0 %v58_v18 }
  0x21   :  { %124 = vmatpush.msra.mxu1 %v99_v23 }
  0x22   :  { %84 = vmatpush.msra.mxu0 %v57_v20 }
  0x23   :  { %125 = vmatpush.msra.mxu1 %v98_v25 }
  0x24   :  { %85 = vmatpush.msra.mxu0 %v56_v22 }
  0x25   :  { %126 = vmatpush.msra.mxu1 %v97_v27 }
  0x26   :  { %86 = vmatpush.msra.mxu0 %v55_v24 }
  0x27   :  { %127 = vmatpush.msra.mxu1 %v96_v30 }
  0x28   :  { %87 = vmatpush.msra.mxu0 %v54_v26 }
  0x29   :  { %128 = vmatpush.msra.mxu1 %v95_v31 }
  0x2a   :  { %88 = vmatpush.msra.mxu0 %v53_v28 }
  0x2b   :  { %89 = vmatmul.f32.vlgmr.msra.gmra.mxu0 %v52_v29  ;;  %129 = vmatpush.msra.mxu1 %v94_v32 }
  0xa8   :  { %v90_v34 = vpop.f32.mrf.mxu0 }
  0xa9   :  { %v91_v35 = vadd.f32 %v145_v33, %v90_v34 }
  0xab   :  { %v93_v36 = vmax.f32 %v91_v35, 0.0 }
  0xad   :  { %130 = vmatmul.f32.vlgmr.msra.gmra.mxu1 %v93_v36 }
 0x12a   :  { %v131_v38 = vpop.f32.mrf.mxu1 }
 0x12b   :  { %v132_v39 = vadd.f32 %v146_v37, %v131_v38 }
 0x12d   :  { %134 = vst [vmem:[%s256_s5] sm:$0xff] %v132_v39 }
 0x12e   :  { %139 = vsyncpa [#allocation3], 1 }
 0x12f   :  { %140 = vsyncpa [#allocation5], 1 }

</bundles_post_ra>
